<compile_context>
chip_gen: v6e
topology: v6e:2x2x1
jax: 0.10.0
libtpu: 0.0.40
codegen_flags: <defaults>
</compile_context>

<pallas_src>
import jax
import jax.numpy as jnp
from jax.experimental import pallas as pl
from jax.experimental.pallas import tpu as pltpu


_LANE_CANDIDATES = (8192, 4096, 2048, 1024, 512, 256, 128)
_TARGET_BLOCK_BYTES = 2 * 1024 * 1024  # ~2 MiB per tile


def _make_as_kernel(strength: float):
    def kernel(x_ref, o_ref):
        # Pure elementwise scale; strength is a compile-time constant.
        o_ref[...] = (x_ref[...] * strength).astype(o_ref.dtype)
    return kernel


def amp_scale(rec_audio: jax.Array, strength: float = 0.85) -> jax.Array:
    """noised_audio = rec_audio * strength via a Pallas TPU kernel.

    Works for any input shape: the array is flattened into a lane-dense
    (rows, cols) slab with cols a large multiple of 128, tiled with ~2 MiB
    blocks over a 1D parallel grid (so v7x's two TensorCores both get work
    when the grid has >= 2 steps).
    """
    orig_shape = rec_audio.shape
    dtype = rec_audio.dtype
    n = rec_audio.size
    itemsize = jnp.dtype(dtype).itemsize

    # --- choose a lane-dense 2D layout --------------------------------------
    cols = None
    for c in _LANE_CANDIDATES:
        if n >= c and n % c == 0:
            cols = c
            break

    if cols is None:
        # Ragged sizes: pad the flat array and slice the result afterwards.
        cols = 512 if n >= 512 else 128
        rows = pl.cdiv(n, cols)
        flat = jnp.pad(rec_audio.reshape(-1), (0, rows * cols - n))
    else:
        rows = n // cols
        flat = rec_audio.reshape(-1)

    x2d = flat.reshape(rows, cols)

    # --- pick block rows so each tile is ~2 MiB (full extent if smaller) ----
    # Sublane packing: 8 rows for 32-bit dtypes, 16 for 16-bit, 32 for 8-bit.
    sublane_mult = max(8, 32 // max(1, itemsize))
    rows_per_block = max(1, _TARGET_BLOCK_BYTES // (cols * itemsize))
    if rows_per_block >= rows:
        block_rows = rows  # full extent: always a legal block shape
    else:
        block_rows = max(sublane_mult,
                         (rows_per_block // sublane_mult) * sublane_mult)
        block_rows = min(block_rows, rows)

    grid = (pl.cdiv(rows, block_rows),)

    out2d = pl.pallas_call(
        _make_as_kernel(float(strength)),
        out_shape=jax.ShapeDtypeStruct((rows, cols), dtype),
        grid=grid,
        in_specs=[pl.BlockSpec((block_rows, cols), lambda i: (i, 0))],
        out_specs=pl.BlockSpec((block_rows, cols), lambda i: (i, 0)),
        compiler_params=pltpu.CompilerParams(
            dimension_semantics=("parallel",),
            vmem_limit_bytes=32 * 1024 * 1024,
        ),
    )(x2d)

    out_flat = out2d.reshape(-1)
    if out_flat.size != n:
        out_flat = out_flat[:n]
    return out_flat.reshape(orig_shape)


if __name__ == "__main__":
    key = jax.random.PRNGKey(0)
    # Small "recorded audio" batch: 2 clips of 2048 samples each.
    rec_audio = jax.random.normal(key, (2, 2048), dtype=jnp.float32)

    out = amp_scale(rec_audio, strength=0.85)
    out = jax.block_until_ready(out)

    expected = rec_audio * 0.85
    assert out.shape == rec_audio.shape and out.dtype == rec_audio.dtype
    assert jnp.allclose(out, expected, atol=1e-6, rtol=1e-6), "mismatch vs reference"
    print("KERNEL_OK")
</pallas_src>

<mosaic_0001>
module attributes {stable_mosaic.version = 11 : i64} {
  func.func @kernel(%arg0: i32, %arg1: memref<1x4096xf32, #tpu.memory_space<vmem>>, %arg2: memref<1x4096xf32, #tpu.memory_space<vmem>>) attributes {dimension_semantics = [#tpu.dimension_semantics<parallel>], iteration_bounds = array<i64: 1>, scalar_prefetch = 0 : i64, scratch_operands = 0 : i64, tpu.core_type = #tpu.core_type<tc>, window_params = [{transform_indices = @transform_0, window_bounds = array<i64: 1, 4096>}, {transform_indices = @transform_1, window_bounds = array<i64: 1, 4096>}]} {
    %c0 = arith.constant 0 : index
    %c0_0 = arith.constant 0 : index
    %0 = vector.load %arg1[%c0, %c0_0] : memref<1x4096xf32, #tpu.memory_space<vmem>>, vector<1x4096xf32>
    %cst = arith.constant 8.500000e-01 : f32
    %1 = vector.broadcast %cst : f32 to vector<1x4096xf32>
    %2 = arith.mulf %0, %1 : vector<1x4096xf32>
    %c0_1 = arith.constant 0 : index
    %c0_2 = arith.constant 0 : index
    %3 = vector.load %arg2[%c0_1, %c0_2] : memref<1x4096xf32, #tpu.memory_space<vmem>>, vector<1x4096xf32>
    tpu.vector_store %arg2[%c0_1, %c0_2], %2 {strides = array<i32>} : memref<1x4096xf32, #tpu.memory_space<vmem>>, vector<1x4096xf32>,
    return
  }
  func.func @transform_0(%arg0: i32) -> (i32, i32) {
    %c0_i32 = arith.constant 0 : i32
    %c0_i32_0 = arith.constant 0 : i32
    return %arg0, %c0_i32 : i32, i32
  }
  func.func @transform_1(%arg0: i32) -> (i32, i32) {
    %c0_i32 = arith.constant 0 : i32
    %c0_i32_0 = arith.constant 0 : i32
    return %arg0, %c0_i32 : i32, i32
  }
}

</mosaic_0001>

<bundles_post_ra>
// kernel: tpu_custom_call.1
= control target key start
LH: loop header
LB: loop body
LE: loop exit
PB: predicated region body
PF: predicated region fallthrough
CT: control target
= control target key end

     0   :  { %6 = vsyncpa [#allocation3], 0  ;;  %s112_s0 = inlined_call_operand.hbm [shape: f32[1,4096], index: 0, kind: input, shape index: {}]   ;;  %s113_s1 = inlined_call_operand.hbm [shape: f32[1,4096], index: 1, kind: output, shape index: {}]  }
   0x1   :  { %7 = vsyncpa [#allocation4], 0  ;;  %s94_s6 = smov [#allocation2]  }
   0x2   :  { %s14_s7 = sshll.u32 %s94_s6, 4  ;;  %s15_s7 = int_to_ptr.vmem [resolvable:$true] %s14_s7 }
   0x3   :  { %s58_s8 = scalar_lea.vmem %s15_s7, 512  ;;  %p63_p1 = scmp.lt.s32.totalorder %s15_s7, %s15_s7 }
   0x4   :  { %p59_p0 = scmp.ne.s32.totalorder %s15_s7, %s58_s8  ;;  %p64_p2 = scmp.lt.s32.totalorder %s58_s8, %s58_s8 }
   0x6   :  { %p65_p3 = por %p64_p2, %p63_p1 }
   0x8   :  { %p66_p4 = pnand %p65_p3, %p59_p0 }
   0xa   :  { %69 = shalt.err (!%p66_p4)
}
   0xb   :  { %17 = dma.hbm_to_vmem [thread:$0]  %s112_s0, 512, %s15_s7, [#allocation3]  }
   0xc   :  { %90 = dma.done.wait [#allocation3], 512  }
   0xd   :  { %91 = vsyncadd [#allocation3], 4294966784  ;;  %v21_v0 = vld [vmem:[#allocation2] sm:$0xff]  ;;  %v22_v1 = vld [vmem:[#allocation2 + $0x8] sm:$0xff]  ;;  %s95_s11 = smov [#allocation5]  }
   0xe   :  { %v23_v2 = vld [vmem:[#allocation2 + $0x10] sm:$0xff]  ;;  %s39_s12 = sshll.u32 %s95_s11, 4  ;;  %v25_v3 = vmul.f32 0.85, %v21_v0  ;;  %v26_v4 = vmul.f32 0.85, %v22_v1  ;;  %s40_s12 = int_to_ptr.vmem [resolvable:$true] %s39_s12 }
   0xf   :  { %v27_v5 = vmul.f32 0.85, %v23_v2  ;;  %v24_v6 = vld [vmem:[#allocation2 + $0x18] sm:$0xff]  ;;  %s70_s13 = scalar_lea.vmem %s40_s12, 512  ;;  %p75_p6 = scmp.lt.s32.totalorder %s40_s12, %s40_s12 }
  0x10   :  { %29 = vst [vmem:[#allocation5] sm:$0xff] %v25_v3  ;;  %30 = vst [vmem:[#allocation5 + $0x8] sm:$0xff] %v26_v4  ;;  %v28_v7 = vmul.f32 0.85, %v24_v6  ;;  %p71_p5 = scmp.ne.s32.totalorder %s40_s12, %s70_s13  ;;  %p76_p7 = scmp.lt.s32.totalorder %s70_s13, %s70_s13 }
  0x11   :  { %31 = vst [vmem:[#allocation5 + $0x10] sm:$0xff] %v27_v5 }
  0x12   :  { %32 = vst [vmem:[#allocation5 + $0x18] sm:$0xff] %v28_v7  ;;  %p77_p8 = por %p76_p7, %p75_p6 }
  0x14   :  { %p78_p9 = pnand %p77_p8, %p71_p5 }
  0x16   :  { %81 = shalt.err (!%p78_p9)
}
  0x17   :  { %42 = dma.vmem_to_hbm [thread:$0]  %s40_s12, 512, %s113_s1, [#allocation4]  }
  0x18   :  { %92 = dma.done.wait [#allocation4], 512  }
  0x19   :  { %93 = vsyncadd [#allocation4], 4294966784 }
  0x1a   :  { %46 = vsyncpa [#allocation3], 1 }
  0x1b   :  { %47 = vsyncpa [#allocation4], 1 }

</bundles_post_ra>
